<compile_context>
chip_gen: v5e
topology: v5e:2x2
jax: 0.10.0
libtpu: 0.0.40
codegen_flags: <defaults>
</compile_context>

<pallas_src>
from functools import partial

import jax
import jax.numpy as jnp
from jax.experimental import pallas as pl
from jax.experimental.pallas import tpu as pltpu


# ----------------------------------------------------------------------------
# Kernel
# ----------------------------------------------------------------------------
def _conv1x1_kernel(x_ref, w_ref, b_ref, o_ref, *, nb, t_cout, n_ctiles, w_resident):
    """1x1 conv on one (nb, C_in, t_hw) activation tile.

    x_ref: (nb, C_in, t_hw)                       channel-major spatial tile(s)
    w_ref: (C_out_pad, C_in) if w_resident else (t_cout, C_in)
    b_ref: (t_cout, 1)
    o_ref: (nb, t_cout, t_hw)
    """
    if w_resident and n_ctiles > 1:
        start = pl.multiple_of(pl.program_id(2) * t_cout, t_cout)
        w = w_ref[pl.ds(start, t_cout), :]
    else:
        w = w_ref[...]
    b = b_ref[...]
    for bi in range(nb):  # nb is a small static int -> unrolled
        acc = jnp.dot(w, x_ref[bi], preferred_element_type=jnp.float32)
        o_ref[bi] = (acc + b).astype(o_ref.dtype)


# ----------------------------------------------------------------------------
# Tiling heuristics (generation-aware)
# ----------------------------------------------------------------------------
def _vmem_budget():
    """Returns (vmem_limit_bytes, working_set_budget_bytes), per generation."""
    cap = None
    try:
        cap = int(getattr(pltpu.get_tpu_info(), "vmem_capacity_bytes", 0)) or None
    except Exception:
        cap = None
    if cap is None:
        cap = 64 * 1024 * 1024  # conservative default (v7x per-core VMEM)
    try:
        kind = jax.devices()[0].device_kind.lower()
        if "7" in kind:  # v7x: 64 MiB per TensorCore even if info reports totals
            cap = min(cap, 64 * 1024 * 1024)
    except Exception:
        pass
    cap = max(32 * 1024 * 1024, min(cap, 128 * 1024 * 1024))
    vmem_limit = (cap * 3) // 4      # 96 MiB on v5e/v6e, 48 MiB on v7x
    budget = vmem_limit // 2         # double-buffered working-set budget
    return vmem_limit, budget


def _choose_cout_tile(c_out):
    # Fixed MXU-friendly widths with a ragged (masked) last block; full extent
    # when C_out is already small.
    if c_out <= 128:
        return c_out
    if c_out <= 256:
        return 128
    return 256


def _choose_hw_tile(hw, c_in, t_cout, itemsize, tile_budget):
    # Largest lane-dense spatial tile whose double-buffered x/out blocks fit
    # the per-generation working-set budget. (Only called for hw >= 128.)
    best = 128
    for cand in (256, 512, 1024, 2048, 4096, 8192):
        if cand > hw:
            break
        if 2 * (c_in + t_cout) * cand * itemsize <= tile_budget:
            best = cand
    return best


# ----------------------------------------------------------------------------
# Wrapper
# ----------------------------------------------------------------------------
def _conv1x1_nchw(x, w, b):
    """x: (N, C_in, H, W); w: (C_out, C_in); b: (C_out, 1) -> (N, C_out, H, W)."""
    N, C_in, H, W = x.shape
    C_out = w.shape[0]
    HW = H * W
    itemsize = x.dtype.itemsize
    # Free reshape: NCHW is already channel-major, so the lane (last) dim is a
    # large contiguous spatial extent -> unmasked, lane-dense loads/stores.
    x3 = x.reshape(N, C_in, HW)

    vmem_limit, budget = _vmem_budget()

    t_cout = _choose_cout_tile(C_out)
    n_ctiles = pl.cdiv(C_out, t_cout)
    c_out_pad = n_ctiles * t_cout

    # Keep the whole weight resident in VMEM when it fits comfortably (one DMA
    # for the entire grid); otherwise stream one (t_cout, C_in) tile per step.
    w_resident_bytes = 2 * c_out_pad * C_in * itemsize  # conservative: x2 buffers
    w_resident = w_resident_bytes <= budget // 2
    tile_budget = budget - (w_resident_bytes if w_resident
                            else 2 * t_cout * C_in * itemsize)

    if HW < 128:
        # Tiny spatial extents (e.g. 7x7 late-ResNet shapes): block several
        # batch elements per grid step to amortize per-step overhead.
        t_hw = HW
        nb = min(N, 8)
        while N % nb:
            nb -= 1
        while nb > 1 and 2 * nb * (C_in + t_cout) * HW * itemsize > tile_budget:
            nb -= 1
    else:
        nb = 1
        t_hw = _choose_hw_tile(HW, C_in, t_cout, itemsize, tile_budget)

    n_btiles = pl.cdiv(N, nb)
    n_htiles = pl.cdiv(HW, t_hw)
    if n_btiles == 1 and n_htiles == 1 and HW > 128:
        # Guarantee >=2 steps on a "parallel" axis so v7x's two TensorCores can
        # both stream HBM; one extra grid step is noise on single-TC chips.
        t_hw = min(t_hw, max(128, ((HW + 1) // 2 + 127) // 128 * 128))
        n_htiles = pl.cdiv(HW, t_hw)

    # Grid order: C_out innermost so the activation tile's block index is
    # constant across the inner loop -> x is read from HBM exactly once.
    grid = (n_btiles, n_htiles, n_ctiles)

    if w_resident:
        if c_out_pad != C_out:
            w_in = jnp.pad(w, ((0, c_out_pad - C_out), (0, 0)))
        else:
            w_in = w
        w_spec = pl.BlockSpec((c_out_pad, C_in), lambda n, h, c: (0, 0))
    else:
        w_in = w
        w_spec = pl.BlockSpec((t_cout, C_in), lambda n, h, c: (c, 0))

    kernel = partial(_conv1x1_kernel, nb=nb, t_cout=t_cout,
                     n_ctiles=n_ctiles, w_resident=w_resident)

    out3 = pl.pallas_call(
        kernel,
        out_shape=jax.ShapeDtypeStruct((N, C_out, HW), x.dtype),
        grid_spec=pltpu.PrefetchScalarGridSpec(
            num_scalar_prefetch=0,
            grid=grid,
            in_specs=[
                # x: block index independent of c (inner axis) -> no re-DMA.
                pl.BlockSpec((nb, C_in, t_hw), lambda n, h, c: (n, 0, h)),
                w_spec,
                # bias tile is tiny; a per-c fetch costs nothing.
                pl.BlockSpec((t_cout, 1), lambda n, h, c: (c, 0)),
            ],
            out_specs=pl.BlockSpec((nb, t_cout, t_hw), lambda n, h, c: (n, c, h)),
        ),
        compiler_params=pltpu.CompilerParams(
            # n/h "parallel" (megacore shards there); c "arbitrary" so sharding
            # never lands on the axis that carries the x-tile reuse.
            dimension_semantics=("parallel", "parallel", "arbitrary"),
            vmem_limit_bytes=int(vmem_limit),
        ),
    )(x3, w_in, b)
    return out3.reshape(N, C_out, H, W)


class RNIdBlockPallas:
    """JAX/Pallas equivalent of RNIdBlock.forward."""

    def __init__(self, n_inpch, n_otpch, key):
        self.n_inpch = n_inpch
        self.n_otpch = n_otpch
        if n_inpch == n_otpch:
            self.weight = None
            self.bias = None
        else:
            kw, kb = jax.random.split(key)
            # PyTorch Conv2d default init: U(-1/sqrt(fan_in), 1/sqrt(fan_in)).
            bound = 1.0 / float(n_inpch) ** 0.5
            # Stored in PyTorch layout (C_out, C_in) (kernel_size=1 squeezed).
            self.weight = jax.random.uniform(
                kw, (n_otpch, n_inpch), jnp.float32, -bound, bound
            )
            self.bias = jax.random.uniform(
                kb, (n_otpch, 1), jnp.float32, -bound, bound
            )
        # NOTE: PyTorch also constructs a BatchNorm2d when channels differ, but
        # forward() only applies blocks[0] (the conv), so BN is not computed.

    def __call__(self, x):
        # x: NCHW
        if self.n_inpch == self.n_otpch:
            # nn.Identity: pure pass-through; no copy kernel / HBM round trip.
            return x
        assert x.shape[1] == self.n_inpch
        return _conv1x1_nchw(x, self.weight, self.bias)


if __name__ == "__main__":
    key = jax.random.PRNGKey(0)
    k_x, k_params, k_params2 = jax.random.split(key, 3)

    def ref_conv(x, blk):
        return jnp.einsum("nchw,oc->nohw", x, blk.weight) + blk.bias[:, 0][
            None, :, None, None
        ]

    # 1) Projection path (channels differ -> 1x1 conv on the MXU).
    N, C_in, C_out, S = 2, 4, 8, 16
    block = RNIdBlockPallas(C_in, C_out, k_params)
    x = jax.random.normal(k_x, (N, C_in, S, S), dtype=jnp.float32)
    y = jax.block_until_ready(block(x))
    assert y.shape == (N, C_out, S, S)
    assert jnp.allclose(y, ref_conv(x, block), atol=1e-4, rtol=1e-4)

    # 2) Ragged spatial tile (H*W not a multiple of the lane tile).
    x_big = jax.random.normal(k_x, (N, C_in, 20, 20), dtype=jnp.float32)
    y_big = jax.block_until_ready(block(x_big))
    assert jnp.allclose(y_big, ref_conv(x_big, block), atol=1e-4, rtol=1e-4)

    # 3) Multi-C_out-tile path (exercises resident-weight in-kernel slicing and
    #    the masked ragged last C_out block).
    block_wide = RNIdBlockPallas(8, 160, k_params2)
    x_wide = jax.random.normal(k_x, (2, 8, 16, 16), dtype=jnp.float32)
    y_wide = jax.block_until_ready(block_wide(x_wide))
    assert y_wide.shape == (2, 160, 16, 16)
    assert jnp.allclose(y_wide, ref_conv(x_wide, block_wide), atol=1e-4, rtol=1e-4)

    # 4) Tiny spatial extent (7x7): batch-blocked kernel path.
    x_small = jax.random.normal(k_x, (4, C_in, 7, 7), dtype=jnp.float32)
    y_small = jax.block_until_ready(block(x_small))
    assert jnp.allclose(y_small, ref_conv(x_small, block), atol=1e-4, rtol=1e-4)

    # 5) Identity path (channels equal).
    block_id = RNIdBlockPallas(C_in, C_in, k_params)
    y_id = jax.block_until_ready(block_id(x))
    assert jnp.allclose(y_id, x)

    print("KERNEL_OK")
</pallas_src>

<mosaic_0001>
module attributes {stable_mosaic.version = 11 : i64} {
  func.func @_conv1x1_kernel(%arg0: i32, %arg1: i32, %arg2: i32, %arg3: memref<1x4x256xf32, #tpu.memory_space<vmem>>, %arg4: memref<8x4xf32, #tpu.memory_space<vmem>>, %arg5: memref<8x1xf32, #tpu.memory_space<vmem>>, %arg6: memref<1x8x256xf32, #tpu.memory_space<vmem>>) attributes {dimension_semantics = [#tpu.dimension_semantics<parallel>, #tpu.dimension_semantics<parallel>, #tpu.dimension_semantics<arbitrary>], iteration_bounds = array<i64: 2, 1, 1>, scalar_prefetch = 0 : i64, scratch_operands = 0 : i64, tpu.core_type = #tpu.core_type<tc>, window_params = [{transform_indices = @transform_0, window_bounds = array<i64: 1, 4, 256>}, {pipeline_mode = #tpu.pipeline_mode<synchronous>, transform_indices = @transform_1, window_bounds = array<i64: 8, 4>}, {transform_indices = @transform_2, window_bounds = array<i64: 8, 1>}, {transform_indices = @transform_3, window_bounds = array<i64: 1, 8, 256>}]} {
    %c0 = arith.constant 0 : index
    %c0_0 = arith.constant 0 : index
    %0 = vector.load %arg4[%c0, %c0_0] : memref<8x4xf32, #tpu.memory_space<vmem>>, vector<8x4xf32>
    %c0_1 = arith.constant 0 : index
    %c0_2 = arith.constant 0 : index
    %1 = vector.load %arg5[%c0_1, %c0_2] : memref<8x1xf32, #tpu.memory_space<vmem>>, vector<8x1xf32>
    %c0_3 = arith.constant 0 : index
    %c0_4 = arith.constant 0 : index
    %c0_5 = arith.constant 0 : index
    %2 = vector.load %arg3[%c0_3, %c0_4, %c0_5] : memref<1x4x256xf32, #tpu.memory_space<vmem>>, vector<1x4x256xf32>
    %3 = vector.shape_cast %2 : vector<1x4x256xf32> to vector<4x256xf32>
    %cst = arith.constant dense<0.000000e+00> : vector<8x256xf32>
    %4 = tpu.matmul %0, %3, %cst {dimension_numbers = #tpu.dot_dimension_numbers<[1], [0], [0], [1], [0, 0, 1, 1], [], []>} : vector<8x4xf32>, vector<4x256xf32>, vector<8x256xf32> -> vector<8x256xf32>
    %5 = vector.broadcast %1 : vector<8x1xf32> to vector<8x256xf32>
    %6 = arith.addf %4, %5 : vector<8x256xf32>
    %c0_6 = arith.constant 0 : index
    %c0_7 = arith.constant 0 : index
    %c0_8 = arith.constant 0 : index
    %7 = vector.load %arg6[%c0_6, %c0_7, %c0_8] : memref<1x8x256xf32, #tpu.memory_space<vmem>>, vector<1x8x256xf32>
    %8 = vector.shape_cast %7 : vector<1x8x256xf32> to vector<8x256xf32>
    %9 = vector.shape_cast %6 : vector<8x256xf32> to vector<1x8x256xf32>
    tpu.vector_store %arg6[%c0_6, %c0_7, %c0_8], %9 {strides = array<i32>} : memref<1x8x256xf32, #tpu.memory_space<vmem>>, vector<1x8x256xf32>,
    return
  }
  func.func @transform_0(%arg0: i32, %arg1: i32, %arg2: i32) -> (i32, i32, i32) {
    %c0_i32 = arith.constant 0 : i32
    %c0_i32_0 = arith.constant 0 : i32
    return %arg0, %c0_i32, %arg1 : i32, i32, i32
  }
  func.func @transform_1(%arg0: i32, %arg1: i32, %arg2: i32) -> (i32, i32) {
    %c0_i32 = arith.constant 0 : i32
    %c0_i32_0 = arith.constant 0 : i32
    %c0_i32_1 = arith.constant 0 : i32
    return %c0_i32, %c0_i32_0 : i32, i32
  }
  func.func @transform_2(%arg0: i32, %arg1: i32, %arg2: i32) -> (i32, i32) {
    %c0_i32 = arith.constant 0 : i32
    %c0_i32_0 = arith.constant 0 : i32
    return %arg2, %c0_i32 : i32, i32
  }
  func.func @transform_3(%arg0: i32, %arg1: i32, %arg2: i32) -> (i32, i32, i32) {
    %c0_i32 = arith.constant 0 : i32
    return %arg0, %arg2, %arg1 : i32, i32, i32
  }
}

</mosaic_0001>

<bundles_post_ra>
// kernel: tpu_custom_call.1
= control target key start
LH: loop header
LB: loop body
LE: loop exit
PB: predicated region body
PF: predicated region fallthrough
CT: control target
= control target key end

     0   :  { %8 = vsyncpa [#allocation3], 0  ;;  %s687_s0 = inlined_call_operand.vmem [shape: f32[2,4,256], index: 0, kind: input, shape index: {}]   ;;  %s688_s1 = inlined_call_operand.vmem [shape: f32[8,4], index: 1, kind: input, shape index: {}]   ;;  %s689_s2 = inlined_call_operand.vmem [shape: f32[8,1], index: 2, kind: input, shape index: {}]   ;;  %s690_s3 = inlined_call_operand.hbm [shape: f32[2,8,256], index: 3, kind: output, shape index: {}]  }
   0x1   :  { %10 = vsyncpa [#allocation3 + $0x1], 0  ;;  %s584_s12 = smov 0   ;;  %s586_s13 = smov 0  }
   0x2   :  { %s588_s14 = smov 0   ;;  %s590_s15 = smov 0  }
   0x3   :  { %s592_s16 = smov 0   ;;  %s594_s17 = smov 0  }
   0x4 LB: > { %s406_s18 = sadd.s32 4294967295, %s561_s17   ;;  %s407_s19 = sadd.s32 4294967294, %s561_s17   ;;  %s561_s17 = sphi %s594_s17, %s16_s17   ;;  %s557_s16 = sphi %s592_s16, %s697_s16   ;;  %s553_s15 = sphi %s590_s15, %s696_s15   ;;  %s549_s14 = sphi %s588_s14, %s695_s14   ;;  %s545_s13 = sphi %s586_s13, %s694_s13   ;;  %s541_s12 = sphi %s584_s12, %s693_s12  }
   0x5   : > { %s35_s20 = sadd.s32 1, %s557_s16  ;;  %s121_s21 = sadd.s32 1, %s549_s14 }
   0x6   : > { %p37_p0 = scmp.ge.s32.totalorder %s35_s20, 2  ;;  %p131_p1 = scmp.ne.s32.totalorder %s549_s14, %s545_s13 }
   0x7   : > { %p132_p2 = scmp.eq.s32.totalorder %s406_s18, 1  ;;  %p137_p3 = scmp.ne.s32.totalorder %s545_s13, %s541_s12 }
   0x8   : > { %s699_s20 = smov (%p37_p0, %s35_s20), 0  ;;  %p138_p5 = scmp.eq.s32.totalorder %s407_s19, 1 }
   0x9   : > { %p624_p4 = por %p132_p2, %p131_p1  ;;  %s114_s23 = ssub.s32 %s557_s16, %s699_s20 }
   0xa   : > { %p411_p6 = scmp.ge.s32.totalorder %s561_s17, 1  ;;  %p119_p7 = scmp.eq.s32.totalorder %s114_s23, 0 }
   0xb   : > { %p631_p8 = por %p138_p5, %p137_p3  ;;  %p179_p9 = scmp.lt.s32.totalorder %s561_s17, 3 }
   0xc   : > { %s637_s25 = scalar_select %p119_p7, %s549_s14, %s121_s21  }
   0xd   : > { %p180_p10 = pnand %p411_p6, %p179_p9 }
   0xe   : > { %p212_p11 = scmp.lt.s32.totalorder (!%p180_p10), %s553_s15, 1  ;;  %s208_s8 = sand.u32 (!%p180_p10), 1, %s545_s13  }
   0xf   : > { %183 = sbr.rel (%p180_p10) target bundleno = 166 (0xa6), region = 32  ;;  %s412_s9 = sshll.u32 (!%p180_p10), %s208_s8, 4 }
  0x10   : > { %s425_s10 = sshll.u32 (!%p180_p10), %s553_s15, 4  ;;  %s210_s21 = scalar_lea.vmem (!%p180_p10), [#allocation2], %s412_s9 }
  0x11   : > { %s305_s19 = scalar_lea.hbm (!%p180_p10), %s690_s3, %s425_s10  ;;  %s307_s23 = sshll.u32 (!%p180_p10), %s210_s21, 4  ;;  %s308_s23 = int_to_ptr.vmem [resolvable:$true] %s307_s23 }
  0x12   : > { %s309_s26 = sshll.u32 (!%p180_p10), %s305_s19, 4  ;;  %s290_s27 = scalar_lea.sflag (!%p180_p10), [#allocation3], %s208_s8  ;;  %s310_s26 = int_to_ptr.hbm [resolvable:$true] %s309_s26 }
  0x13   : > { %s503_s4 = scalar_lea.hbm (!%p180_p10), %s690_s3, 32 }
  0x14   : > { %v227_v0 = vld [vmem:[%s689_s2] sm:$0xff]  ;;  %v563_v1 = vmov 0   ;;  %s213_s28 = scalar_select %p212_p11, %s553_s15, 1  ;;  %vm242_vm0 = vcmask 1043456   ;;  %vm238_vm1 = vcmask 31744  }
  0x15   : > { %482 = vset.pattern.permute.xlu0 %v563_v1  ;;  %v226_v3 = vld [vmem:[%s688_s1] sm:$0xff] }
  0x16   : > { %231 = vperm.xlu0 %482, %v227_v0   ;;  %s424_s29 = sshll.u32 %s213_s28, 3  ;;  %s497_s28 = sshra.s32 %s310_s26, 4  ;;  %s498_s28 = int_to_ptr.hbm [resolvable:$true] %s497_s28 }
  0x17   : > { %s219_s5 = scalar_lea.vmem %s687_s0, %s424_s29  ;;  %s499_s15 = scalar_lea.hbm %s498_s28, 16 }
  0x18   : > { %v228_v2 = vld [vmem:[%s219_s5] sm:$0xff]  ;;  %p500_p12 = scmp.ne.s32.totalorder %s498_s28, %s499_s15  ;;  %p504_p1 = scmp.lt.s32.totalorder %s498_s28, %s690_s3 }
  0x19   : > { %235 = vst [vmem:[#allocation1] ss:$2 sm:$0xff] %v228_v2  ;;  %p505_p2 = scmp.lt.s32.totalorder %s503_s4, %s499_s15 }
  0x1a   : > { %p501_p13 = pnand %p500_p12, %p624_p4 }
  0x1b   : > { %p506_p3 = por %p505_p2, %p504_p1 }
  0x1c   : > { %p502_p0 = pneg %p501_p13 }
  0x1e   : > { %p507_p5 = pnand %p506_p3, %p502_p0 }
  0x20   : > { %v236_v4 = vld.sshfl [vmem:[#allocation1] sm:$0xff pattern:$0x75316420]  ;;  %v237_v5 = vld.sshfl [vmem:[#allocation1 + $0x8] sm:$0xff pattern:$0x75316420] }
  0x21   : > { %415 = vmatpush.msk.msra.mxu0 %vm242_vm0, %v236_v4  ;;  %417 = vmatpush.msk.msra.mxu1 %vm242_vm0, %v237_v5 }
  0x22   : > { %416 = vmatmul.msk.f32.vlgmr.msra.gmra.mxu0 %vm238_vm1, %v226_v3  ;;  %418 = vmatmul.msk.f32.vlgmr.msra.gmra.mxu1 %vm238_vm1, %v226_v3 }
  0x88   : > { %v232_v6 = vpop.permute.xlu0 %231 }
  0x9f   : > { %v264_v7 = vpop.f32.mrf.mxu0  ;;  %v284_v8 = vpop.f32.mrf.mxu1 }
  0xa0   : > { %v265_v9 = vadd.f32 %v264_v7, %v232_v6  ;;  %v285_v10 = vadd.f32 %v284_v8, %v232_v6 }
  0xa2   : > { %287 = vst [vmem:[%s210_s21] sm:$0xff] %v265_v9 }
  0xa3   : > { %288 = vst [vmem:[%s210_s21 + $0x8] sm:$0xff] %v285_v10 }
  0xa4   : > { %510 = shalt.err (!%p507_p5)
}
  0xa5   : > { %426 = dma.vmem_to_hbm [thread:$0]  (%p624_p4), %s308_s23, 256, %s310_s26, %s290_s27  }
  0xa6 PF: > { %p432_p6 = scmp.ge.s32.totalorder %s561_s17, 2  ;;  %s321_s7 = sand.u32 1, %s541_s12  }
  0xa7   : > { %s322_s8 = scalar_lea.sflag [#allocation3], %s321_s7 }
  0xa8   : > { %p429_p7 = pnand %p432_p6, %p631_p8 }
  0xaa   : > { %p430_p9 = pneg %p429_p7 }
  0xac   : > { %536 = dma.done.wait (%p430_p9), %s322_s8, 256  }
  0xad   : > { %538 = vsyncadd (%p430_p9), %s322_s8, 4294967040  ;;  %s16_s17 = sadd.s32 1, %s561_s17   ;;  %s693_s12 = smov %s545_s13 }
  0xae   : > { %p13_p10 = scmp.ge.s32.totalorder %s16_s17, 4   ;;  %s694_s13 = smov %s549_s14 }
  0xaf   : > { %s695_s14 = smov %s637_s25  ;;  %s696_s15 = smov %s557_s16 }
  0xb0   : > { %s697_s16 = smov %s699_s20  ;;  %15 = sbr.rel (!%p13_p10) target bundleno = 4 (0x4), region = 70 }
  0xb5   :  { %328 = vsyncpa [#allocation3], 1 }
  0xb6   :  { %330 = vsyncpa [#allocation3 + $0x1], 1 }

</bundles_post_ra>
